<compile_context>
chip_gen: v7x
topology: tpu7x:2x2x1
jax: 0.10.0
libtpu: 0.0.40
codegen_flags: <defaults>
</compile_context>

<pallas_src>
import functools

import jax
import jax.numpy as jnp
from jax.experimental import pallas as pl
from jax.experimental.pallas import tpu as pltpu


def _decode_fold_kernel(x_ref, w_ref, b_ref, p_ref, o_ref, *, C, ps, G, R, Cps):
    """Fused linear + bias + Fold for R patch rows of one image.

    x_ref : (1, T, E)      input dtype (T = R*G tokens)
    w_ref : (E, c_out)     bf16, columns permuted to (kw, c, kh) order
    b_ref : (1, c_out)     f32, same column order
    p_ref : (W, W)         f32 permutation: lane kw*G+gj -> lane gj*ps+kw
    o_ref : (1, C, R*ps, W) output dtype (NCHW block)
    """
    # In-kernel bf16 cast of the activations (no wrapper cast/pad pass).
    x_bf = x_ref[0].astype(jnp.bfloat16)                       # (T, E)
    y = jnp.dot(x_bf, w_ref[...], preferred_element_type=jnp.float32)
    y = y + b_ref[...]                                         # (T, c_out) f32
    perm = p_ref[...]                                          # (W, W) f32

    for gi in range(R):                                        # static unroll
        yg = y[gi * G:(gi + 1) * G, :]                         # (G, c_out)
        # Rows of `stack` are ordered (kw, gj); columns are r = c*ps + kh.
        stack = jnp.concatenate(
            [yg[:, kw * Cps:(kw + 1) * Cps] for kw in range(ps)], axis=0)
        # (Cps, ps*G) @ (ps*G, W): reorders lanes to (gj, kw) = folded width.
        folded = jnp.dot(stack.T, perm, preferred_element_type=jnp.float32)
        folded = folded.astype(o_ref.dtype)                    # (C*ps, W)
        for c in range(C):
            o_ref[0, c, gi * ps:(gi + 1) * ps, :] = \
                folded[c * ps:(c + 1) * ps, :]


def _vmem_bytes(R, G, ps, E, C, W, itemsize):
    """Rough per-step VMEM footprint (inputs/outputs double-buffered)."""
    T = R * G
    c_out = C * ps * ps
    tiles = (T * E * itemsize            # x block
             + E * c_out * 2             # resident bf16 weight
             + c_out * 4                 # bias
             + W * W * 4                 # fold permutation
             + C * R * ps * W * itemsize)  # output block
    work = 3 * T * c_out * 4             # y / stack / folded working values
    return 2 * tiles + work


def _pick_rows_per_step(B, G, ps, E, C, W, itemsize, vmem_budget):
    """Patch rows per grid step, honoring block-shape and VMEM constraints."""
    def valid(r):
        # Last-two dims of each BlockSpec must be a multiple of 8 sublanes or
        # span the full array dim (r == G covers the "full" case).
        return G % r == 0 and (r == G or ((r * G) % 8 == 0 and (r * ps) % 8 == 0))

    cands = [r for r in range(1, G + 1) if valid(r)]
    fits = [r for r in cands if r * G <= 512] or [min(cands)]
    pref = [r for r in fits if (r * G) % 16 == 0] or fits   # bf16 packs 16 rows
    R = max(pref)
    if B * (G // R) < 2:                                    # v7x: 2 TensorCores
        alt = ([r for r in pref if B * (G // r) >= 2]
               or [r for r in fits if B * (G // r) >= 2])
        if alt:
            R = max(alt)
    while _vmem_bytes(R, G, ps, E, C, W, itemsize) > vmem_budget:
        smaller = [r for r in cands if r < R]
        if not smaller:
            break
        R = max(smaller)
    return R


def patch_decoder_call(x, w_perm, b_perm, perm, *, out_channels, patch_size,
                       img_size, rows_per_step, vmem_limit_bytes):
    B, N, E = x.shape
    C, ps = out_channels, patch_size
    G = img_size // ps
    R = rows_per_step
    T = R * G
    c_out = C * ps * ps
    W = img_size

    kernel = functools.partial(_decode_fold_kernel,
                               C=C, ps=ps, G=G, R=R, Cps=C * ps)
    return pl.pallas_call(
        kernel,
        out_shape=jax.ShapeDtypeStruct((B, C, img_size, img_size), x.dtype),
        grid_spec=pltpu.PrefetchScalarGridSpec(
            num_scalar_prefetch=0,
            grid=(B, G // R),
            in_specs=[
                pl.BlockSpec((1, T, E), lambda b, t: (b, t, 0)),     # x tokens
                pl.BlockSpec((E, c_out), lambda b, t: (0, 0)),       # resident W
                pl.BlockSpec((1, c_out), lambda b, t: (0, 0)),       # resident bias
                pl.BlockSpec((W, W), lambda b, t: (0, 0)),           # resident perm
            ],
            out_specs=pl.BlockSpec((1, C, R * ps, W), lambda b, t: (b, 0, t, 0)),
        ),
        compiler_params=pltpu.CompilerParams(
            # No reduction axis (single K step); both axes shard across cores.
            dimension_semantics=("parallel", "parallel"),
            vmem_limit_bytes=vmem_limit_bytes,
        ),
    )(x, w_perm, b_perm, perm)


def prepare_patch_decoder_params(w, b, *, out_channels, patch_size, img_size):
    """One-time param prep (hoisted off the per-call hot path).

    w : (C*ps*ps, emb_size)  PyTorch nn.Linear weight layout
    b : (C*ps*ps,)
    Returns:
      w_perm : (E, c_out) bf16, columns permuted from (c, kh, kw) to (kw, c, kh)
      b_perm : (1, c_out) f32, same column order
      perm   : (W, W) f32 Fold permutation (lane kw*G+gj -> lane gj*ps+kw)
    """
    C, ps = out_channels, patch_size
    G = img_size // ps
    W = img_size
    c_out, E = w.shape
    assert c_out == C * ps * ps

    w_t = jnp.transpose(w).reshape(E, C, ps, ps)              # (E, c, kh, kw)
    w_perm = jnp.transpose(w_t, (0, 3, 1, 2)).reshape(E, c_out)
    b_perm = jnp.transpose(b.astype(jnp.float32).reshape(C, ps, ps),
                           (2, 0, 1)).reshape(1, c_out)

    kw = jnp.arange(ps)
    gj = jnp.arange(G)
    rows = (kw[:, None] * G + gj[None, :]).reshape(-1)
    cols = (gj[None, :] * ps + kw[:, None]).reshape(-1)
    perm = jnp.zeros((W, W), jnp.float32).at[rows, cols].set(1.0)
    return w_perm.astype(jnp.bfloat16), b_perm, perm


def patch_decoder_forward(x, w_perm, b_perm, perm, *, out_channels, patch_size,
                          img_size):
    """x: (B, N, emb_size) -> (B, out_channels, img_size, img_size) NCHW."""
    B, N, E = x.shape
    C, ps = out_channels, patch_size
    G = img_size // ps
    assert N == G * G, "token count must match the patch grid"
    W = img_size

    # Per-generation VMEM budget (v7x only has 64 MiB physical VMEM).
    try:
        cap = getattr(pltpu.get_tpu_info(), "vmem_capacity_bytes", 64 * 2**20)
    except Exception:
        cap = 64 * 2**20
    vmem_limit = min(int(cap * 0.7), 96 * 2**20)

    R = _pick_rows_per_step(B, G, ps, E, C, W, x.dtype.itemsize,
                            vmem_budget=int(vmem_limit * 0.8))
    return patch_decoder_call(
        x, w_perm, b_perm, perm,
        out_channels=C, patch_size=ps, img_size=img_size,
        rows_per_step=R, vmem_limit_bytes=vmem_limit)


if __name__ == "__main__":
    # Small config consistent with the module.
    B = 2
    out_channels = 3
    patch_size = 4
    img_size = 16
    emb_size = 32
    N = (img_size // patch_size) ** 2                 # 16 patches
    c_out = out_channels * patch_size * patch_size    # 48

    key = jax.random.PRNGKey(0)
    kx, kw_, kb = jax.random.split(key, 3)

    x = jax.random.normal(kx, (B, N, emb_size), dtype=jnp.float32)

    # Deterministic nn.Linear-style init (uniform in +/- 1/sqrt(fan_in)).
    bound = 1.0 / (emb_size ** 0.5)
    w = jax.random.uniform(kw_, (c_out, emb_size), jnp.float32, -bound, bound)
    b = jax.random.uniform(kb, (c_out,), jnp.float32, -bound, bound)

    # One-time param prep (weight permutation / bf16 cast / fold perm matrix).
    w_perm, b_perm, perm = prepare_patch_decoder_params(
        w, b, out_channels=out_channels, patch_size=patch_size,
        img_size=img_size)

    fwd = jax.jit(functools.partial(
        patch_decoder_forward,
        out_channels=out_channels, patch_size=patch_size, img_size=img_size))
    out = jax.block_until_ready(fwd(x, w_perm, b_perm, perm))

    # Pure-JAX reference (bf16-rounded operands like the kernel, f32 accumulate).
    xb = x.astype(jnp.bfloat16).astype(jnp.float32)
    wb = w.astype(jnp.bfloat16).astype(jnp.float32)
    y_ref = xb.reshape(B * N, emb_size) @ wb.T + b            # (B*N, c_out)
    G = img_size // patch_size
    y_ref = y_ref.reshape(B, G, G, out_channels, patch_size, patch_size)
    ref = jnp.transpose(y_ref, (0, 3, 1, 4, 2, 5)).reshape(
        B, out_channels, img_size, img_size)

    assert out.shape == (B, out_channels, img_size, img_size)
    assert out.dtype == jnp.float32
    max_err = float(jnp.max(jnp.abs(out - ref)))
    assert jnp.allclose(out, ref, atol=1e-2, rtol=1e-2), max_err

    print("KERNEL_OK")
</pallas_src>

<mosaic_0001>
module attributes {stable_mosaic.version = 11 : i64} {
  func.func @_decode_fold_kernel(%arg0: i32, %arg1: i32, %arg2: memref<1x16x32xf32, #tpu.memory_space<vmem>>, %arg3: memref<32x48xbf16, #tpu.memory_space<vmem>>, %arg4: memref<1x48xf32, #tpu.memory_space<vmem>>, %arg5: memref<16x16xf32, #tpu.memory_space<vmem>>, %arg6: memref<1x3x16x16xf32, #tpu.memory_space<vmem>>) attributes {dimension_semantics = [#tpu.dimension_semantics<parallel>, #tpu.dimension_semantics<parallel>], iteration_bounds = array<i64: 2, 1>, scalar_prefetch = 0 : i64, scratch_operands = 0 : i64, tpu.core_type = #tpu.core_type<tc>, window_params = [{transform_indices = @transform_0, window_bounds = array<i64: 1, 16, 32>}, {pipeline_mode = #tpu.pipeline_mode<synchronous>, transform_indices = @transform_1, window_bounds = array<i64: 32, 48>}, {pipeline_mode = #tpu.pipeline_mode<synchronous>, transform_indices = @transform_2, window_bounds = array<i64: 1, 48>}, {pipeline_mode = #tpu.pipeline_mode<synchronous>, transform_indices = @transform_3, window_bounds = array<i64: 16, 16>}, {transform_indices = @transform_4, window_bounds = array<i64: 1, 3, 16, 16>}]} {
    %c0 = arith.constant 0 : index
    %c0_0 = arith.constant 0 : index
    %c0_1 = arith.constant 0 : index
    %0 = vector.load %arg2[%c0, %c0_0, %c0_1] : memref<1x16x32xf32, #tpu.memory_space<vmem>>, vector<1x16x32xf32>
    %1 = vector.shape_cast %0 : vector<1x16x32xf32> to vector<16x32xf32>
    %2 = arith.truncf %1 : vector<16x32xf32> to vector<16x32xbf16>
    %c0_2 = arith.constant 0 : index
    %c0_3 = arith.constant 0 : index
    %3 = vector.load %arg3[%c0_2, %c0_3] : memref<32x48xbf16, #tpu.memory_space<vmem>>, vector<32x48xbf16>
    %cst = arith.constant dense<0.000000e+00> : vector<16x48xf32>
    %4 = tpu.matmul %2, %3, %cst {dimension_numbers = #tpu.dot_dimension_numbers<[1], [0], [0], [1], [0, 0, 1, 1], [], []>} : vector<16x32xbf16>, vector<32x48xbf16>, vector<16x48xf32> -> vector<16x48xf32>
    %c0_4 = arith.constant 0 : index
    %c0_5 = arith.constant 0 : index
    %5 = vector.load %arg4[%c0_4, %c0_5] : memref<1x48xf32, #tpu.memory_space<vmem>>, vector<1x48xf32>
    %6 = vector.broadcast %5 : vector<1x48xf32> to vector<16x48xf32>
    %7 = arith.addf %4, %6 : vector<16x48xf32>
    %c0_6 = arith.constant 0 : index
    %c0_7 = arith.constant 0 : index
    %8 = vector.load %arg5[%c0_6, %c0_7] : memref<16x16xf32, #tpu.memory_space<vmem>>, vector<16x16xf32>
    %9 = vector.extract_strided_slice %7 {offsets = [0, 0], sizes = [4, 48], strides = [1, 1]} : vector<16x48xf32> to vector<4x48xf32>
    %10 = vector.extract_strided_slice %9 {offsets = [0, 0], sizes = [4, 12], strides = [1, 1]} : vector<4x48xf32> to vector<4x12xf32>
    %11 = vector.extract_strided_slice %9 {offsets = [0, 12], sizes = [4, 12], strides = [1, 1]} : vector<4x48xf32> to vector<4x12xf32>
    %12 = vector.extract_strided_slice %9 {offsets = [0, 24], sizes = [4, 12], strides = [1, 1]} : vector<4x48xf32> to vector<4x12xf32>
    %13 = vector.extract_strided_slice %9 {offsets = [0, 36], sizes = [4, 12], strides = [1, 1]} : vector<4x48xf32> to vector<4x12xf32>
    %14 = tpu.concatenate %10, %11, %12, %13 in 0 : vector<4x12xf32>, vector<4x12xf32>, vector<4x12xf32>, vector<4x12xf32> -> vector<16x12xf32>
    %15 = tpu.transpose %14, [1, 0] : vector<16x12xf32> -> vector<12x16xf32>
    %cst_8 = arith.constant dense<0.000000e+00> : vector<12x16xf32>
    %16 = tpu.matmul %15, %8, %cst_8 {dimension_numbers = #tpu.dot_dimension_numbers<[1], [0], [0], [1], [0, 0, 1, 1], [], []>} : vector<12x16xf32>, vector<16x16xf32>, vector<12x16xf32> -> vector<12x16xf32>
    %17 = vector.extract_strided_slice %16 {offsets = [0, 0], sizes = [4, 16], strides = [1, 1]} : vector<12x16xf32> to vector<4x16xf32>
    %c0_9 = arith.constant 0 : index
    %c0_10 = arith.constant 0 : index
    %c0_11 = arith.constant 0 : index
    %c0_12 = arith.constant 0 : index
    %18 = vector.load %arg6[%c0_9, %c0_10, %c0_11, %c0_12] : memref<1x3x16x16xf32, #tpu.memory_space<vmem>>, vector<1x1x4x16xf32>
    %19 = vector.shape_cast %18 : vector<1x1x4x16xf32> to vector<4x16xf32>
    %20 = vector.shape_cast %17 : vector<4x16xf32> to vector<1x1x4x16xf32>
    tpu.vector_store %arg6[%c0_9, %c0_10, %c0_11, %c0_12], %20 {strides = array<i32>} : memref<1x3x16x16xf32, #tpu.memory_space<vmem>>, vector<1x1x4x16xf32>,
    %21 = vector.extract_strided_slice %16 {offsets = [4, 0], sizes = [4, 16], strides = [1, 1]} : vector<12x16xf32> to vector<4x16xf32>
    %c0_13 = arith.constant 0 : index
    %c1 = arith.constant 1 : index
    %c0_14 = arith.constant 0 : index
    %c0_15 = arith.constant 0 : index
    %22 = vector.load %arg6[%c0_13, %c1, %c0_14, %c0_15] : memref<1x3x16x16xf32, #tpu.memory_space<vmem>>, vector<1x1x4x16xf32>
    %23 = vector.shape_cast %22 : vector<1x1x4x16xf32> to vector<4x16xf32>
    %24 = vector.shape_cast %21 : vector<4x16xf32> to vector<1x1x4x16xf32>
    tpu.vector_store %arg6[%c0_13, %c1, %c0_14, %c0_15], %24 {strides = array<i32>} : memref<1x3x16x16xf32, #tpu.memory_space<vmem>>, vector<1x1x4x16xf32>,
    %25 = vector.extract_strided_slice %16 {offsets = [8, 0], sizes = [4, 16], strides = [1, 1]} : vector<12x16xf32> to vector<4x16xf32>
    %c0_16 = arith.constant 0 : index
    %c2 = arith.constant 2 : index
    %c0_17 = arith.constant 0 : index
    %c0_18 = arith.constant 0 : index
    %26 = vector.load %arg6[%c0_16, %c2, %c0_17, %c0_18] : memref<1x3x16x16xf32, #tpu.memory_space<vmem>>, vector<1x1x4x16xf32>
    %27 = vector.shape_cast %26 : vector<1x1x4x16xf32> to vector<4x16xf32>
    %28 = vector.shape_cast %25 : vector<4x16xf32> to vector<1x1x4x16xf32>
    tpu.vector_store %arg6[%c0_16, %c2, %c0_17, %c0_18], %28 {strides = array<i32>} : memref<1x3x16x16xf32, #tpu.memory_space<vmem>>, vector<1x1x4x16xf32>,
    %29 = vector.extract_strided_slice %7 {offsets = [4, 0], sizes = [4, 48], strides = [1, 1]} : vector<16x48xf32> to vector<4x48xf32>
    %30 = vector.extract_strided_slice %29 {offsets = [0, 0], sizes = [4, 12], strides = [1, 1]} : vector<4x48xf32> to vector<4x12xf32>
    %31 = vector.extract_strided_slice %29 {offsets = [0, 12], sizes = [4, 12], strides = [1, 1]} : vector<4x48xf32> to vector<4x12xf32>
    %32 = vector.extract_strided_slice %29 {offsets = [0, 24], sizes = [4, 12], strides = [1, 1]} : vector<4x48xf32> to vector<4x12xf32>
    %33 = vector.extract_strided_slice %29 {offsets = [0, 36], sizes = [4, 12], strides = [1, 1]} : vector<4x48xf32> to vector<4x12xf32>
    %34 = tpu.concatenate %30, %31, %32, %33 in 0 : vector<4x12xf32>, vector<4x12xf32>, vector<4x12xf32>, vector<4x12xf32> -> vector<16x12xf32>
    %35 = tpu.transpose %34, [1, 0] : vector<16x12xf32> -> vector<12x16xf32>
    %cst_19 = arith.constant dense<0.000000e+00> : vector<12x16xf32>
    %36 = tpu.matmul %35, %8, %cst_19 {dimension_numbers = #tpu.dot_dimension_numbers<[1], [0], [0], [1], [0, 0, 1, 1], [], []>} : vector<12x16xf32>, vector<16x16xf32>, vector<12x16xf32> -> vector<12x16xf32>
    %37 = vector.extract_strided_slice %36 {offsets = [0, 0], sizes = [4, 16], strides = [1, 1]} : vector<12x16xf32> to vector<4x16xf32>
    %c0_20 = arith.constant 0 : index
    %c0_21 = arith.constant 0 : index
    %c4 = arith.constant 4 : index
    %c0_22 = arith.constant 0 : index
    %38 = vector.load %arg6[%c0_20, %c0_21, %c4, %c0_22] : memref<1x3x16x16xf32, #tpu.memory_space<vmem>>, vector<1x1x4x16xf32>
    %39 = vector.shape_cast %38 : vector<1x1x4x16xf32> to vector<4x16xf32>
    %40 = vector.shape_cast %37 : vector<4x16xf32> to vector<1x1x4x16xf32>
    tpu.vector_store %arg6[%c0_20, %c0_21, %c4, %c0_22], %40 {strides = array<i32>} : memref<1x3x16x16xf32, #tpu.memory_space<vmem>>, vector<1x1x4x16xf32>,
    %41 = vector.extract_strided_slice %36 {offsets = [4, 0], sizes = [4, 16], strides = [1, 1]} : vector<12x16xf32> to vector<4x16xf32>
    %c0_23 = arith.constant 0 : index
    %c1_24 = arith.constant 1 : index
    %c4_25 = arith.constant 4 : index
    %c0_26 = arith.constant 0 : index
    %42 = vector.load %arg6[%c0_23, %c1_24, %c4_25, %c0_26] : memref<1x3x16x16xf32, #tpu.memory_space<vmem>>, vector<1x1x4x16xf32>
    %43 = vector.shape_cast %42 : vector<1x1x4x16xf32> to vector<4x16xf32>
    %44 = vector.shape_cast %41 : vector<4x16xf32> to vector<1x1x4x16xf32>
    tpu.vector_store %arg6[%c0_23, %c1_24, %c4_25, %c0_26], %44 {strides = array<i32>} : memref<1x3x16x16xf32, #tpu.memory_space<vmem>>, vector<1x1x4x16xf32>,
    %45 = vector.extract_strided_slice %36 {offsets = [8, 0], sizes = [4, 16], strides = [1, 1]} : vector<12x16xf32> to vector<4x16xf32>
    %c0_27 = arith.constant 0 : index
    %c2_28 = arith.constant 2 : index
    %c4_29 = arith.constant 4 : index
    %c0_30 = arith.constant 0 : index
    %46 = vector.load %arg6[%c0_27, %c2_28, %c4_29, %c0_30] : memref<1x3x16x16xf32, #tpu.memory_space<vmem>>, vector<1x1x4x16xf32>
    %47 = vector.shape_cast %46 : vector<1x1x4x16xf32> to vector<4x16xf32>
    %48 = vector.shape_cast %45 : vector<4x16xf32> to vector<1x1x4x16xf32>
    tpu.vector_store %arg6[%c0_27, %c2_28, %c4_29, %c0_30], %48 {strides = array<i32>} : memref<1x3x16x16xf32, #tpu.memory_space<vmem>>, vector<1x1x4x16xf32>,
    %49 = vector.extract_strided_slice %7 {offsets = [8, 0], sizes = [4, 48], strides = [1, 1]} : vector<16x48xf32> to vector<4x48xf32>
    %50 = vector.extract_strided_slice %49 {offsets = [0, 0], sizes = [4, 12], strides = [1, 1]} : vector<4x48xf32> to vector<4x12xf32>
    %51 = vector.extract_strided_slice %49 {offsets = [0, 12], sizes = [4, 12], strides = [1, 1]} : vector<4x48xf32> to vector<4x12xf32>
    %52 = vector.extract_strided_slice %49 {offsets = [0, 24], sizes = [4, 12], strides = [1, 1]} : vector<4x48xf32> to vector<4x12xf32>
    %53 = vector.extract_strided_slice %49 {offsets = [0, 36], sizes = [4, 12], strides = [1, 1]} : vector<4x48xf32> to vector<4x12xf32>
    %54 = tpu.concatenate %50, %51, %52, %53 in 0 : vector<4x12xf32>, vector<4x12xf32>, vector<4x12xf32>, vector<4x12xf32> -> vector<16x12xf32>
    %55 = tpu.transpose %54, [1, 0] : vector<16x12xf32> -> vector<12x16xf32>
    %cst_31 = arith.constant dense<0.000000e+00> : vector<12x16xf32>
    %56 = tpu.matmul %55, %8, %cst_31 {dimension_numbers = #tpu.dot_dimension_numbers<[1], [0], [0], [1], [0, 0, 1, 1], [], []>} : vector<12x16xf32>, vector<16x16xf32>, vector<12x16xf32> -> vector<12x16xf32>
    %57 = vector.extract_strided_slice %56 {offsets = [0, 0], sizes = [4, 16], strides = [1, 1]} : vector<12x16xf32> to vector<4x16xf32>
    %c0_32 = arith.constant 0 : index
    %c0_33 = arith.constant 0 : index
    %c8 = arith.constant 8 : index
    %c0_34 = arith.constant 0 : index
    %58 = vector.load %arg6[%c0_32, %c0_33, %c8, %c0_34] : memref<1x3x16x16xf32, #tpu.memory_space<vmem>>, vector<1x1x4x16xf32>
    %59 = vector.shape_cast %58 : vector<1x1x4x16xf32> to vector<4x16xf32>
    %60 = vector.shape_cast %57 : vector<4x16xf32> to vector<1x1x4x16xf32>
    tpu.vector_store %arg6[%c0_32, %c0_33, %c8, %c0_34], %60 {strides = array<i32>} : memref<1x3x16x16xf32, #tpu.memory_space<vmem>>, vector<1x1x4x16xf32>,
    %61 = vector.extract_strided_slice %56 {offsets = [4, 0], sizes = [4, 16], strides = [1, 1]} : vector<12x16xf32> to vector<4x16xf32>
    %c0_35 = arith.constant 0 : index
    %c1_36 = arith.constant 1 : index
    %c8_37 = arith.constant 8 : index
    %c0_38 = arith.constant 0 : index
    %62 = vector.load %arg6[%c0_35, %c1_36, %c8_37, %c0_38] : memref<1x3x16x16xf32, #tpu.memory_space<vmem>>, vector<1x1x4x16xf32>
    %63 = vector.shape_cast %62 : vector<1x1x4x16xf32> to vector<4x16xf32>
    %64 = vector.shape_cast %61 : vector<4x16xf32> to vector<1x1x4x16xf32>
    tpu.vector_store %arg6[%c0_35, %c1_36, %c8_37, %c0_38], %64 {strides = array<i32>} : memref<1x3x16x16xf32, #tpu.memory_space<vmem>>, vector<1x1x4x16xf32>,
    %65 = vector.extract_strided_slice %56 {offsets = [8, 0], sizes = [4, 16], strides = [1, 1]} : vector<12x16xf32> to vector<4x16xf32>
    %c0_39 = arith.constant 0 : index
    %c2_40 = arith.constant 2 : index
    %c8_41 = arith.constant 8 : index
    %c0_42 = arith.constant 0 : index
    %66 = vector.load %arg6[%c0_39, %c2_40, %c8_41, %c0_42] : memref<1x3x16x16xf32, #tpu.memory_space<vmem>>, vector<1x1x4x16xf32>
    %67 = vector.shape_cast %66 : vector<1x1x4x16xf32> to vector<4x16xf32>
    %68 = vector.shape_cast %65 : vector<4x16xf32> to vector<1x1x4x16xf32>
    tpu.vector_store %arg6[%c0_39, %c2_40, %c8_41, %c0_42], %68 {strides = array<i32>} : memref<1x3x16x16xf32, #tpu.memory_space<vmem>>, vector<1x1x4x16xf32>,
    %69 = vector.extract_strided_slice %7 {offsets = [12, 0], sizes = [4, 48], strides = [1, 1]} : vector<16x48xf32> to vector<4x48xf32>
    %70 = vector.extract_strided_slice %69 {offsets = [0, 0], sizes = [4, 12], strides = [1, 1]} : vector<4x48xf32> to vector<4x12xf32>
    %71 = vector.extract_strided_slice %69 {offsets = [0, 12], sizes = [4, 12], strides = [1, 1]} : vector<4x48xf32> to vector<4x12xf32>
    %72 = vector.extract_strided_slice %69 {offsets = [0, 24], sizes = [4, 12], strides = [1, 1]} : vector<4x48xf32> to vector<4x12xf32>
    %73 = vector.extract_strided_slice %69 {offsets = [0, 36], sizes = [4, 12], strides = [1, 1]} : vector<4x48xf32> to vector<4x12xf32>
    %74 = tpu.concatenate %70, %71, %72, %73 in 0 : vector<4x12xf32>, vector<4x12xf32>, vector<4x12xf32>, vector<4x12xf32> -> vector<16x12xf32>
    %75 = tpu.transpose %74, [1, 0] : vector<16x12xf32> -> vector<12x16xf32>
    %cst_43 = arith.constant dense<0.000000e+00> : vector<12x16xf32>
    %76 = tpu.matmul %75, %8, %cst_43 {dimension_numbers = #tpu.dot_dimension_numbers<[1], [0], [0], [1], [0, 0, 1, 1], [], []>} : vector<12x16xf32>, vector<16x16xf32>, vector<12x16xf32> -> vector<12x16xf32>
    %77 = vector.extract_strided_slice %76 {offsets = [0, 0], sizes = [4, 16], strides = [1, 1]} : vector<12x16xf32> to vector<4x16xf32>
    %c0_44 = arith.constant 0 : index
    %c0_45 = arith.constant 0 : index
    %c12 = arith.constant 12 : index
    %c0_46 = arith.constant 0 : index
    %78 = vector.load %arg6[%c0_44, %c0_45, %c12, %c0_46] : memref<1x3x16x16xf32, #tpu.memory_space<vmem>>, vector<1x1x4x16xf32>
    %79 = vector.shape_cast %78 : vector<1x1x4x16xf32> to vector<4x16xf32>
    %80 = vector.shape_cast %77 : vector<4x16xf32> to vector<1x1x4x16xf32>
    tpu.vector_store %arg6[%c0_44, %c0_45, %c12, %c0_46], %80 {strides = array<i32>} : memref<1x3x16x16xf32, #tpu.memory_space<vmem>>, vector<1x1x4x16xf32>,
    %81 = vector.extract_strided_slice %76 {offsets = [4, 0], sizes = [4, 16], strides = [1, 1]} : vector<12x16xf32> to vector<4x16xf32>
    %c0_47 = arith.constant 0 : index
    %c1_48 = arith.constant 1 : index
    %c12_49 = arith.constant 12 : index
    %c0_50 = arith.constant 0 : index
    %82 = vector.load %arg6[%c0_47, %c1_48, %c12_49, %c0_50] : memref<1x3x16x16xf32, #tpu.memory_space<vmem>>, vector<1x1x4x16xf32>
    %83 = vector.shape_cast %82 : vector<1x1x4x16xf32> to vector<4x16xf32>
    %84 = vector.shape_cast %81 : vector<4x16xf32> to vector<1x1x4x16xf32>
    tpu.vector_store %arg6[%c0_47, %c1_48, %c12_49, %c0_50], %84 {strides = array<i32>} : memref<1x3x16x16xf32, #tpu.memory_space<vmem>>, vector<1x1x4x16xf32>,
    %85 = vector.extract_strided_slice %76 {offsets = [8, 0], sizes = [4, 16], strides = [1, 1]} : vector<12x16xf32> to vector<4x16xf32>
    %c0_51 = arith.constant 0 : index
    %c2_52 = arith.constant 2 : index
    %c12_53 = arith.constant 12 : index
    %c0_54 = arith.constant 0 : index
    %86 = vector.load %arg6[%c0_51, %c2_52, %c12_53, %c0_54] : memref<1x3x16x16xf32, #tpu.memory_space<vmem>>, vector<1x1x4x16xf32>
    %87 = vector.shape_cast %86 : vector<1x1x4x16xf32> to vector<4x16xf32>
    %88 = vector.shape_cast %85 : vector<4x16xf32> to vector<1x1x4x16xf32>
    tpu.vector_store %arg6[%c0_51, %c2_52, %c12_53, %c0_54], %88 {strides = array<i32>} : memref<1x3x16x16xf32, #tpu.memory_space<vmem>>, vector<1x1x4x16xf32>,
    return
  }
  func.func @transform_0(%arg0: i32, %arg1: i32) -> (i32, i32, i32) {
    %c0_i32 = arith.constant 0 : i32
    %c0_i32_0 = arith.constant 0 : i32
    return %arg0, %arg1, %c0_i32 : i32, i32, i32
  }
  func.func @transform_1(%arg0: i32, %arg1: i32) -> (i32, i32) {
    %c0_i32 = arith.constant 0 : i32
    %c0_i32_0 = arith.constant 0 : i32
    %c0_i32_1 = arith.constant 0 : i32
    return %c0_i32, %c0_i32_0 : i32, i32
  }
  func.func @transform_2(%arg0: i32, %arg1: i32) -> (i32, i32) {
    %c0_i32 = arith.constant 0 : i32
    %c0_i32_0 = arith.constant 0 : i32
    %c0_i32_1 = arith.constant 0 : i32
    return %c0_i32, %c0_i32_0 : i32, i32
  }
  func.func @transform_3(%arg0: i32, %arg1: i32) -> (i32, i32) {
    %c0_i32 = arith.constant 0 : i32
    %c0_i32_0 = arith.constant 0 : i32
    %c0_i32_1 = arith.constant 0 : i32
    return %c0_i32, %c0_i32_0 : i32, i32
  }
  func.func @transform_4(%arg0: i32, %arg1: i32) -> (i32, i32, i32, i32) {
    %c0_i32 = arith.constant 0 : i32
    %c0_i32_0 = arith.constant 0 : i32
    %c0_i32_1 = arith.constant 0 : i32
    return %arg0, %c0_i32, %arg1, %c0_i32_0 : i32, i32, i32, i32
  }
}

</mosaic_0001>

<bundles_post_ra>
// kernel: patch_decoder_forward.1
= control target key start
LH: loop header
LB: loop body
LE: loop exit
PB: predicated region body
PF: predicated region fallthrough
CT: control target
= control target key end

     0   :  { %9 = vsyncpa [#allocation3], 0  ;;  %s1694_s0 = inlined_call_operand.hbm [shape: f32[2,16,32], index: 0, kind: input, shape index: {}]   ;;  %s1695_s1 = inlined_call_operand.hbm [shape: bf16[32,48], index: 1, kind: input, shape index: {}]   ;;  %s1696_s2 = inlined_call_operand.vmem [shape: f32[1,48], index: 2, kind: input, shape index: {}]   ;;  %s1697_s3 = inlined_call_operand.hbm [shape: f32[16,16], index: 3, kind: input, shape index: {}]   ;;  %s1698_s4 = inlined_call_operand.hbm [shape: f32[2,3,16,16], index: 4, kind: output, shape index: {}]  }
   0x1   :  { %11 = vsyncpa [#allocation3 + $0x1], 0 }
   0x2   :  { %12 = vsyncpa [#allocation6], 0 }
   0x3   :  { %13 = vsyncpa [#allocation4], 0 }
   0x4   :  { %15 = vsyncpa [#allocation4 + $0x1], 0  ;;  %s1401_s15 = smov 0   ;;  %s1403_s16 = smov 0  }
   0x5   :  { %s1405_s17 = smov 0   ;;  %s1407_s18 = smov 0  }
   0x6   :  { %s1409_s19 = smov 0   ;;  %s1411_s20 = smov 0  }
   0x7 LB: > { %s981_s21 = sadd.s32 4294967295, %s1359_s20   ;;  %s982_s22 = sadd.s32 4294967294, %s1359_s20   ;;  %s1359_s20 = sphi %s1411_s20, %s21_s20   ;;  %s1355_s19 = sphi %s1409_s19, %s1720_s19   ;;  %s1351_s18 = sphi %s1407_s18, %s1719_s18   ;;  %s1347_s17 = sphi %s1405_s17, %s1718_s17   ;;  %s1343_s16 = sphi %s1403_s16, %s1717_s16   ;;  %s1339_s15 = sphi %s1401_s15, %s1716_s15  }
   0x8   : > { %p55_p0 = scmp.ne.s32.totalorder %s1343_s16, %s1339_s15  ;;  %p1435_p1 = scmp.eq.s32.totalorder %s981_s21, 0 }
   0x9   : > { %p1439_p2 = scmp.eq.s32.totalorder %s981_s21, 1  ;;  %p150_p3 = scmp.eq.s32.totalorder %s982_s22, 1 }
   0xa   : > { %s1703_s23 = scalar_select %p1435_p1, 1, 0 }
   0xb   : > { %p1445_p4 = por %p1435_p1, %p55_p0  ;;  %p983_p5 = scmp.ge.s32.totalorder %s1359_s20, 1 }
   0xc   : > { %p1450_p6 = por %p150_p3, %p55_p0  ;;  %p157_p7 = scmp.lt.s32.totalorder %s1359_s20, 3 }
   0xd   : > { %s1705_s25 = scalar_select %p1445_p4, 1, 0 }
   0xe   : > { %s1706_s26 = scalar_select %p1450_p6, 1, 0 }
   0xf   : > { %p1455_p8 = pnand %p983_p5, %p157_p7  ;;  %s1361_s28 = smov [#allocation5]  }
  0x10   : > { %s169_s29 = sshll.u32 %s1361_s28, 4  ;;  %s1362_s5 = smov [#allocation7]   ;;  %s1459_s29 = int_to_ptr.vmem [resolvable:$true] %s169_s29 }
  0x11   : > { %p1103_p9 = pneg %p1455_p8  ;;  %s185_s6 = sshll.u32 %s1362_s5, 4  ;;  %s1470_s6 = int_to_ptr.vmem [resolvable:$true] %s185_s6 }
  0x12   : > { %s1187_s9 = scalar_lea.hbm %s1695_s1, 256 }
  0x13   : > { %p1466_p11 = pnand %p1103_p9, %p1435_p1  ;;  %p1188_p12 = scmp.ne.s32.totalorder %s1695_s1, %s1187_s9 }
  0x14   : > { %p1194_p5 = scmp.lt.u32.totalorder %s1187_s9, %s1695_s1 }
  0x15   : > { %p1189_p13 = pneg %p1466_p11 }
  0x17   : > { %p1190_p0 = pnand %p1189_p13, %p1188_p12 }
  0x19   : > { %p1191_p3 = pneg %p1190_p0 }
  0x1b   : > { %p1196_p7 = pnand %p1194_p5, %p1191_p3 }
  0x1d   : > { %1199 = shalt.err (!%p1196_p7)
}
  0x1e   : > { %s1200_s14 = scalar_lea.vmem %s1459_s29, 256  ;;  %p1208_p1 = scmp.lt.s32.totalorder %s1459_s29, %s1459_s29 }
  0x1f   : > { %p1201_p9 = scmp.ne.s32.totalorder %s1459_s29, %s1200_s14  ;;  %p1209_p12 = scmp.lt.s32.totalorder %s1200_s14, %s1200_s14 }
  0x21   : > { %p1203_p10 = pnand %p1201_p9, %p1189_p13  ;;  %p1210_p0 = por %p1209_p12, %p1208_p1 }
  0x23   : > { %p1204_p6 = pneg %p1203_p10 }
  0x25   : > { %p1211_p4 = pnand %p1210_p0, %p1204_p6 }
  0x27   : > { %1214 = shalt.err (!%p1211_p4)
}
  0x28   : > { %s1363_s21 = smov 64   ;;  %s1364_s22 = smov 4  }
  0x29   : > { %1106 = dma.hbm_to_vmem [thread:$0]  (!%p1466_p11), %s1695_s1, 256, %s1459_s29, [#allocation6], %s1363_s21, %s1363_s21, %s1364_s22  }
  0x2a   : > { %s1215_s9 = scalar_lea.hbm %s1697_s3, 256 }
  0x2b   : > { %p1216_p1 = scmp.ne.s32.totalorder %s1697_s3, %s1215_s9  ;;  %p1222_p10 = scmp.lt.u32.totalorder %s1215_s9, %s1697_s3 }
  0x2d   : > { %p1218_p4 = pnand %p1216_p1, %p1189_p13 }
  0x2f   : > { %p1219_p6 = pneg %p1218_p4 }
  0x31   : > { %p1224_p3 = pnand %p1222_p10, %p1219_p6 }
  0x33   : > { %1227 = shalt.err (!%p1224_p3)
}
  0x34   : > { %s1228_s29 = scalar_lea.vmem %s1470_s6, 256  ;;  %p1236_p12 = scmp.lt.s32.totalorder %s1470_s6, %s1470_s6 }
  0x35   : > { %p1229_p5 = scmp.ne.s32.totalorder %s1470_s6, %s1228_s29  ;;  %p1237_p0 = scmp.lt.s32.totalorder %s1228_s29, %s1228_s29 }
  0x37   : > { %p1231_p7 = pnand %p1229_p5, %p1189_p13  ;;  %p1238_p1 = por %p1237_p0, %p1236_p12 }
  0x39   : > { %p1232_p9 = pneg %p1231_p7 }
  0x3b   : > { %p1239_p4 = pnand %p1238_p1, %p1232_p9 }
  0x3d   : > { %1242 = shalt.err (!%p1239_p4)
}
  0x3e   : > { %s1365_s14 = smov 128   ;;  %s1366_s21 = smov 8  }
  0x3f   : > { %1109 = dma.hbm_to_vmem [thread:$0]  (!%p1466_p11), %s1697_s3, 256, %s1470_s6, [#allocation6], %s1365_s14, %s1365_s14, %s1366_s21  }
  0x40   : > { %s33_s5 = sadd.s32 1, %s1355_s19  ;;  %s42_s7 = sadd.s32 1, %s1347_s17 }
  0x41   : > { %p35_p13 = scmp.ge.s32.totalorder %s33_s5, 2  ;;  %p49_p6 = scmp.ne.s32.totalorder %s1347_s17, %s1343_s16 }
  0x42   : > { %p50_p10 = scmp.eq.s32.totalorder %s1359_s20, 0  ;;  %p1120_p3 = scmp.lt.s32.totalorder %s1359_s20, 2 }
  0x43   : > { %s1722_s5 = smov (%p35_p13, %s33_s5), 0  ;;  %p1537_p7 = por %p1439_p2, %p49_p6 }
  0x44   : > { %p51_p5 = por %p50_p10, %p49_p6  ;;  %s37_s8 = ssub.s32 %s1355_s19, %s1722_s5 }
  0x45   : > { %s1709_s30 = scalar_select %p1537_p7, 1, 0 }
  0x46   : > { %s199_s9 = sand.u32 1, %s1347_s17   ;;  %p40_p9 = scmp.eq.s32.totalorder %s37_s8, 0 }
  0x47   : > { %s987_s6 = sshll.u32 %s199_s9, 4  ;;  %s1017_s10 = sshll.u32 %s1355_s19, 8 }
  0x48   : > { %s1546_s11 = scalar_select %p40_p9, %s1347_s17, %s42_s7  }
  0x49   : > { %s1551_s29 = scalar_lea.hbm %s1694_s0, %s1017_s10  ;;  %s203_s24 = scalar_lea.vmem [#allocation2], %s987_s6 }
  0x4a   : > { %s212_s22 = sshll.u32 %s203_s24, 4  ;;  %p1555_p2 = pnand %p1120_p3, %p51_p5  ;;  %s1559_s22 = int_to_ptr.vmem [resolvable:$true] %s212_s22 }
  0x4b   : > { %s1561_s7 = scalar_lea.sflag [#allocation3], %s199_s9  ;;  %s1243_s8 = scalar_lea.hbm %s1551_s29, 256 }
  0x4c   : > { %p1244_p11 = scmp.ne.s32.totalorder %s1551_s29, %s1243_s8  ;;  %p1245_p12 = pneg %p1555_p2 }
  0x4d   : > { %s1248_s12 = scalar_lea.hbm %s1694_s0, 512  ;;  %p1249_p4 = scmp.lt.u32.totalorder %s1551_s29, %s1694_s0 }
  0x4e   : > { %p1246_p0 = pnand %p1245_p12, %p1244_p11  ;;  %p1250_p13 = scmp.lt.u32.totalorder %s1248_s12, %s1243_s8 }
  0x4f   : > { %p1252_p10 = scmp.lt.u32.totalorder %s1243_s8, %s1551_s29 }
  0x50   : > { %p1247_p1 = pneg %p1246_p0  ;;  %p1251_p6 = por %p1250_p13, %p1249_p4 }
  0x52   : > { %p1253_p3 = por %p1252_p10, %p1251_p6 }
  0x54   : > { %p1254_p5 = pnand %p1253_p3, %p1247_p1 }
  0x56   : > { %1257 = shalt.err (!%p1254_p5)
}
  0x57   : > { %s1258_s9 = scalar_lea.vmem %s1559_s22, 256  ;;  %s1367_s6 = smov [#allocation2]  }
  0x58   : > { %p1259_p9 = scmp.ne.s32.totalorder %s1559_s22, %s1258_s9  ;;  %s1263_s10 = sshll.u32 %s1367_s6, 4  ;;  %s1264_s10 = int_to_ptr.vmem [resolvable:$false] %s1263_s10 }
  0x59   : > { %s1265_s13 = scalar_lea.vmem %s1264_s10, 512  ;;  %p1266_p7 = scmp.lt.s32.totalorder %s1559_s22, %s1264_s10 }
  0x5a   : > { %p1261_p11 = pnand %p1259_p9, %p1245_p12  ;;  %p1267_p4 = scmp.lt.s32.totalorder %s1265_s13, %s1258_s9 }
  0x5c   : > { %p1262_p0 = pneg %p1261_p11  ;;  %p1268_p13 = por %p1267_p4, %p1266_p7 }
  0x5e   : > { %p1269_p6 = pnand %p1268_p13, %p1262_p0 }
  0x60   : > { %1272 = shalt.err (!%p1269_p6)
}
  0x61   : > { %1113 = dma.hbm_to_vmem [thread:$0]  (!%p1555_p2), %s1551_s29, 256, %s1559_s22, %s1561_s7, %s1365_s14, %s1365_s14, %s1366_s21  }
  0x62   : > { %224 = sbr.rel (%p1455_p8) target bundleno = 834 (0x342), region = 36  ;;  %s1595_s8 = sand.u32 (!%p1455_p8), 1, %s1343_s16  }
  0x63   : > { %s991_s12 = sshll.u32 (!%p1455_p8), %s1595_s8, 4  ;;  %s227_s24 = scalar_lea.sflag (!%p1455_p8), [#allocation3], %s1595_s8 }
  0x64   : > { %s230_s9 = scalar_lea.vmem (!%p1455_p8), [#allocation2], %s991_s12  ;;  %p1711_p7 = scmp.ne.s32.totalorder (!%p1455_p8), %s1705_s25, 0 }
  0x69   : > { %1326 = dma.done.wait (%p1711_p7), %s227_s24, 256  }
  0x6a   : > { %1328 = vsyncadd (%p1711_p7), %s227_s24, 4294967040  ;;  %p1712_p12 = scmp.ne.s32.totalorder %s1703_s23, 0 }
  0x6c   : > { %1330 = dma.done.wait (%p1712_p12), [#allocation6], 512  }
  0x6d   : > { %1332 = vsyncadd (%p1712_p12), [#allocation6], 4294966784  ;;  %v1368_v0 = vmov 0.0   ;;  %vm1369_vm0 = vmmov 0   ;;  %v1185_v1 = vld [vmem:[#allocation5] sm:$0xff]   ;;  %v1186_v2 = vld [vmem:[#allocation5 + $0x8] sm:$0xff]  }
  0x6e   : > { %1037 = vmatprep.subr.bf16.mxu0 %v1368_v0  ;;  %1041 = vmatprep.mubr.msk.bf16.mxu0 %vm1369_vm0, %v1368_v0  ;;  %v266_v3 = vld [vmem:[%s230_s9] sm:$0xff]  ;;  %v267_v4 = vld [vmem:[%s230_s9 + $0x8] sm:$0xff]  ;;  %vm292_vm1 = vcmask 261120   ;;  %s1370_s23 = smov 116   ;;  %s1371_s14 = smov 104   ;;  %vm350_vm2 = vcmask 1043456  }
  0x6f   : > { %1038 = vmatpush3.bf16.msra.mxu0 %v1185_v1  ;;  %v268_v5 = vpack.c.bf16 %v267_v4, %v266_v3  ;;  %v994_v6 = vld [vmem:[%s1696_s2] ss:$0 sm:$0xff]  ;;  %s1372_s21 = smov 92   ;;  %v337_v21 = vld [vmem:[#allocation7] sm:$0xff]  ;;  %v338_v22 = vld [vmem:[#allocation7 + $0x8] sm:$0xff]  ;;  %vm385_vm3 = vcmask 130048  }
  0x70   : > { %1039 = vmatprep.subr.bf16.mxu0 %v1368_v0  ;;  %v1073_v23 = vpack.c.bf16 %v338_v22, %v337_v21  ;;  %s1089_s29 = smul.u32 48, %s1595_s8  ;;  %vm467_vm4 = vcmask 125952   ;;  %vm470_vm5 = vcmask 130052   ;;  %p1713_p2 = scmp.ne.s32.totalorder %s1709_s30, 0 }
  0x71   : > { %s1090_s28 = smul.u32 768, %s1351_s18  ;;  %s860_s18 = scalar_lea.sflag [#allocation4], %s1595_s8 }
  0x72   : > { %1074 = vmatprep.subr.bf16.mxu1 %v1073_v23  ;;  %s262_s22 = scalar_lea.vmem [#allocation8], %s1089_s29  ;;  %s1373_s24 = smov [#allocation8]  }
  0x73   : > { %1040 = vmatpush3.bf16.msra.mxu0 %v1186_v2  ;;  %1076 = vmatpush3.bf16.msra.mxu1 %v1073_v23  ;;  %s875_s7 = sshll.u32 %s262_s22, 4  ;;  %s1640_s13 = scalar_lea.hbm %s1698_s4, %s1090_s28  ;;  %s1642_s7 = int_to_ptr.vmem [resolvable:$true] %s875_s7 }
  0x74   : > { %1086 = vmatprep.subr.bf16.mxu0 %v1073_v23  ;;  %1078 = vmatprep.subr.bf16.mxu1 %v1073_v23  ;;  %s1273_s12 = scalar_lea.vmem %s1642_s7, 768  ;;  %s1277_s9 = sshll.u32 %s1373_s24, 4  ;;  %s1278_s9 = int_to_ptr.vmem [resolvable:$false] %s1277_s9 }
  0x75   : > { %p1274_p8 = scmp.ne.s32.totalorder %s1642_s7, %s1273_s12  ;;  %s1279_s25 = scalar_lea.vmem %s1278_s9, 1536 }
  0x76   : > { %1042 = vmatmul.mubr.msk.bf16.vlgmr.msra.gmra.mrb[0].mxu0 %vm292_vm1, %v268_v5  ;;  %p1280_p3 = scmp.lt.s32.totalorder %s1642_s7, %s1278_s9  ;;  %p1281_p5 = scmp.lt.s32.totalorder %s1279_s25, %s1273_s12 }
  0x77   : > { %1088 = vmatpush3.bf16.msra.mxu0 %v1073_v23  ;;  %p1275_p1 = pnand %p1274_p8, %p1713_p2 }
  0x78   : > { %p1282_p9 = por %p1281_p5, %p1280_p3 }
  0x79   : > { %p1276_p10 = pneg %p1275_p1 }
  0x7b   : > { %p1283_p11 = pnand %p1282_p9, %p1276_p10 }
 0x149   : > { %v330_v7 = vpop.f32.mrb[0].mxu0 }
 0x14a   : > { %v331_v8 = vadd.f32 %v994_v6, %v330_v7  ;;  %v1043_v9 = vpop.f32.mrb[1].mxu0 }
 0x14b   : > { %v333_v10 = vpop.f32.mrb[2].mxu0 }
 0x14c   : > { %475 = vrot.lane.b32.xlu1 %v331_v8, %s1370_s23  ;;  %344 = vrot.lane.b32.xlu0 %v331_v8, %s1371_s14  ;;  %v1044_v11 = vpop.f32.mrb[3].mxu0  ;;  %v340_v12 = vrot.slane %v331_v8, 4  ;;  %v334_v13 = vadd.f32 %v994_v6, %v333_v10 }
 0x14e   : > { %v603_v14 = vrot.slane %v334_v13, 4 }
 0x150   : > { %481 = vrot.lane.b32.xlu1 %v331_v8, %s1372_s21  ;;  %341 = vrot.lane.b32.xlu0 %v340_v12, %s1370_s23 }
 0x154   : > { %347 = vrot.lane.b32.xlu1 %v340_v12, %s1372_s21  ;;  %478 = vrot.lane.b32.xlu0 %v340_v12, %s1371_s14 }
 0x158   : > { %607 = vrot.lane.b32.xlu0 %v334_v13, %s1371_s14  ;;  %732 = vrot.lane.b32.xlu1 %v334_v13, %s1370_s23 }
 0x15c   : > { %610 = vrot.lane.b32.xlu1 %v603_v14, %s1372_s21  ;;  %604 = vrot.lane.b32.xlu0 %v603_v14, %s1370_s23 }
 0x160   : > { %738 = vrot.lane.b32.xlu1 %v334_v13, %s1372_s21  ;;  %735 = vrot.lane.b32.xlu0 %v603_v14, %s1371_s14 }
 0x1be   : > { %v476_v15 = vpop.permute.xlu1 %475  ;;  %v345_v16 = vpop.permute.xlu0 %344 }
 0x1bf   : > { %v484_v17 = vsel %vm350_vm2, %v340_v12, %v476_v15 }
 0x1c0   : > { %486 = vxpose.xlu1.b32.start [1/2] (short) (narrow) %v484_v17, 16 }
 0x1c2   : > { %v482_v18 = vpop.permute.xlu1 %481  ;;  %v342_v19 = vpop.permute.xlu0 %341 }
 0x1c3   : > { %v351_v20 = vsel %vm350_vm2, %v331_v8, %v342_v19 }
 0x1c4   : > { %353 = vxpose.xlu0.b32.start [1/2] (short) (narrow) %v351_v20, 16 }
 0x1c6   : > { %v348_v24 = vpop.permute.xlu1 %347  ;;  %v479_v25 = vpop.permute.xlu0 %478 }
 0x1c7   : > { %v485_v26 = vsel %vm350_vm2, %v479_v25, %v482_v18  ;;  %v352_v27 = vsel %vm350_vm2, %v345_v16, %v348_v24 }
 0x1c8   : > { %487 = vxpose.xlu1.b32.end [2/2] (short) (narrow) %v485_v26, 16  ;;  %354 = vxpose.xlu0.b32.end [2/2] (short) (narrow) %v352_v27, 16 }
 0x1ca   : > { %v608_v28 = vpop.permute.xlu0 %607  ;;  %v733_v29 = vpop.permute.xlu1 %732 }
 0x1cb   : > { %v741_v34 = vsel %vm350_vm2, %v603_v14, %v733_v29 }
 0x1ce   : > { %v605_v30 = vpop.permute.xlu0 %604  ;;  %v611_v32 = vpop.permute.xlu1 %610 }
 0x1cf   : > { %v613_v31 = vsel %vm350_vm2, %v334_v13, %v605_v30  ;;  %v614_v33 = vsel %vm350_vm2, %v608_v28, %v611_v32 }
 0x1d0   : > { %615 = vxpose.xlu0.b32.start [1/2] (short) (narrow) %v613_v31, 16 }
 0x1d2   : > { %v739_v35 = vpop.permute.xlu1 %738  ;;  %v736_v36 = vpop.permute.xlu0 %735 }
 0x1d3   : > { %v742_v37 = vsel %vm350_vm2, %v736_v36, %v739_v35 }
 0x1d4   : > { %616 = vxpose.xlu0.b32.end [2/2] (short) (narrow) %v614_v33, 16 }
 0x1d8   : > { %743 = vxpose.xlu0.b32.start [1/2] (short) (narrow) %v741_v34, 16 }
 0x1dc   : > { %744 = vxpose.xlu0.b32.end [2/2] (short) (narrow) %v742_v37, 16 }
 0x244   : > { %v369_v38 = vpop.trf.xlu0  ;;  %v502_v39 = vpop.trf.xlu1 }
 0x245   : > { %1049 = vmatprep.mubr.msk.f32.mxu1 %vm385_vm3, %v369_v38 }
 0x248   : > { %v370_v40 = vpop.trf.xlu0  ;;  %v503_v41 = vpop.trf.xlu1 }
 0x249   : > { %1050 = vmatmul.mubr.msk.f32.vlgmr.msra.gmra.mrb[0].mxu1 %vm385_vm3, %v370_v40 }
 0x24a   : > { %1080 = vmatpush3.bf16.msra.mxu1 %v1073_v23  ;;  %1056 = vmatprep.mubr.msk.f32.mxu1 %vm385_vm3, %v502_v39 }
 0x24b   : > { %1082 = vmatprep.subr.bf16.mxu1 %v1073_v23 }
 0x24d   : > { %1057 = vmatmul.mubr.msk.f32.vlgmr.msra.gmra.mrb[2].mxu1 %vm385_vm3, %v503_v41 }
 0x24e   : > { %1084 = vmatpush3.bf16.msra.mxu1 %v1073_v23 }
 0x250   : > { %v631_v42 = vpop.trf.xlu0 }
 0x251   : > { %1063 = vmatprep.mubr.msk.f32.mxu1 %vm385_vm3, %v631_v42 }
 0x254   : > { %v632_v43 = vpop.trf.xlu0 }
 0x255   : > { %1064 = vmatmul.mubr.msk.f32.vlgmr.msra.gmra.mrb[4].mxu1 %vm385_vm3, %v632_v43 }
 0x258   : > { %v759_v44 = vpop.trf.xlu0 }
 0x259   : > { %1070 = vmatprep.mubr.msk.f32.mxu0 %vm385_vm3, %v759_v44 }
 0x25c   : > { %v760_v45 = vpop.trf.xlu0 }
 0x25d   : > { %1071 = vmatmul.mubr.msk.f32.vlgmr.msra.gmra.mrb[4].mxu0 %vm385_vm3, %v760_v45 }
 0x31c   : > { %v1051_v46 = vpop.f32.mrb[0].mxu1 }
 0x31d   : > { %1001 = vst.msk [vmem:[%s262_s22 + $0x20] sm:$0xf] %vm467_vm4, %v1051_v46  ;;  %v458_v47 = vpop.f32.mrb[1].mxu1 }
 0x31e   : > { %468 = vst.msk [vmem:[%s262_s22] sm:$0xf] %vm467_vm4, %v458_v47 }
 0x31f   : > { %1000 = vst.msk [vmem:[%s262_s22 + $0xc] sm:$0xf0] %vm470_vm5, %v458_v47 }
 0x320   : > { %v1058_v48 = vpop.f32.mrb[2].mxu1 }
 0x321   : > { %1005 = vst.msk [vmem:[%s262_s22 + $0x24] sm:$0xf] %vm467_vm4, %v1058_v48  ;;  %v590_v49 = vpop.f32.mrb[3].mxu1 }
 0x322   : > { %599 = vst.msk [vmem:[%s262_s22 + $0x4] sm:$0xf] %vm467_vm4, %v590_v49 }
 0x323   : > { %1004 = vst.msk [vmem:[%s262_s22 + $0x10] sm:$0xf0] %vm470_vm5, %v590_v49 }
 0x328   : > { %v1065_v50 = vpop.f32.mrb[4].mxu1 }
 0x329   : > { %1009 = vst.msk [vmem:[%s262_s22 + $0x28] sm:$0xf] %vm467_vm4, %v1065_v50  ;;  %v719_v51 = vpop.f32.mrb[5].mxu1 }
 0x32a   : > { %728 = vst.msk [vmem:[%s262_s22 + $0x8] sm:$0xf] %vm467_vm4, %v719_v51 }
 0x32b   : > { %1008 = vst.msk [vmem:[%s262_s22 + $0x14] sm:$0xf0] %vm470_vm5, %v719_v51 }
 0x330   : > { %v1072_v52 = vpop.f32.mrb[4].mxu0 }
 0x331   : > { %1013 = vst.msk [vmem:[%s262_s22 + $0x2c] sm:$0xf] %vm467_vm4, %v1072_v52  ;;  %v847_v53 = vpop.f32.mrb[5].mxu0 }
 0x332   : > { %856 = vst.msk [vmem:[%s262_s22 + $0xc] sm:$0xf] %vm467_vm4, %v847_v53 }
 0x333   : > { %1012 = vst.msk [vmem:[%s262_s22 + $0x18] sm:$0xf0] %vm470_vm5, %v847_v53 }
 0x334   : > { %1286 = shalt.err (!%p1283_p11)
}
 0x335   : > { %s1287_s27 = scalar_lea.hbm %s1640_s13, 768  ;;  %s1291_s21 = scalar_lea.hbm %s1698_s4, 1536 }
 0x336   : > { %p1288_p0 = scmp.ne.s32.totalorder %s1640_s13, %s1287_s27  ;;  %p1292_p6 = scmp.lt.u32.totalorder %s1640_s13, %s1698_s4 }
 0x337   : > { %p1293_p7 = scmp.lt.u32.totalorder %s1291_s21, %s1287_s27  ;;  %p1295_p8 = scmp.lt.u32.totalorder %s1287_s27, %s1640_s13 }
 0x338   : > { %p1289_p4 = pnand %p1288_p0, %p1713_p2 }
 0x339   : > { %p1294_p12 = por %p1293_p7, %p1292_p6 }
 0x33a   : > { %p1290_p13 = pneg %p1289_p4 }
 0x33b   : > { %p1296_p1 = por %p1295_p8, %p1294_p12 }
 0x33d   : > { %p1297_p10 = pnand %p1296_p1, %p1290_p13 }
 0x33f   : > { %1300 = shalt.err (!%p1297_p10)
}
 0x340   : > { %s1374_s28 = smov 128   ;;  %s1375_s6 = smov 8  }
 0x341   : > { %1101 = dma.vmem_to_hbm [thread:$0]  (%p1713_p2), %s1642_s7, 768, %s1640_s13, %s860_s18, %s1374_s28, %s1374_s28, %s1375_s6  }
 0x342 PF: > { %s890_s10 = sand.u32 1, %s1339_s15   ;;  %p1714_p3 = scmp.ne.s32.totalorder %s1706_s26, 0 }
 0x343   : > { %p1715_p5 = scmp.ge.s32.totalorder %s1359_s20, 2  ;;  %s891_s12 = scalar_lea.sflag [#allocation4], %s890_s10 }
 0x345   : > { %p1115_p9 = pnand %p1715_p5, %p1714_p3 }
 0x347   : > { %1334 = dma.done.wait (!%p1115_p9), %s891_s12, 768  }
 0x348   : > { %1336 = vsyncadd (!%p1115_p9), %s891_s12, 4294966528  ;;  %s21_s20 = sadd.s32 1, %s1359_s20   ;;  %s1716_s15 = smov %s1343_s16 }
 0x349   : > { %p18_p11 = scmp.ge.s32.totalorder %s21_s20, 4   ;;  %s1717_s16 = smov %s1347_s17 }
 0x34a   : > { %s1718_s17 = smov %s1546_s11  ;;  %s1719_s18 = smov %s1355_s19 }
 0x34b   : > { %s1720_s19 = smov %s1722_s5  ;;  %20 = sbr.rel (!%p18_p11) target bundleno = 7 (0x7), region = 91 }
 0x352   :  { %896 = vsyncpa [#allocation3], 1 }
 0x353   :  { %898 = vsyncpa [#allocation3 + $0x1], 1 }
 0x354   :  { %899 = vsyncpa [#allocation6], 1 }
 0x355   :  { %900 = vsyncpa [#allocation4], 1 }
 0x356   :  { %902 = vsyncpa [#allocation4 + $0x1], 1 }

</bundles_post_ra>
